<compile_context>
chip_gen: v6e
topology: v6e:2x2x1
jax: 0.10.0
libtpu: 0.0.40
codegen_flags: <defaults>
</compile_context>

<pallas_src>
import jax
import jax.numpy as jnp
from jax.experimental import pallas as pl
from jax.experimental.pallas import tpu as pltpu


def _round_up(x, m):
    return (x + m - 1) // m * m


def _shrink_sequence_tanh_kernel(h_ref, w2_ref, b_ref, out_ref, acc_ref):
    # h:   (B, TK)         streamed activation slab (weight_dtype)
    # w2:  (TK, tl)        contiguous streamed W2 block (weight_dtype)
    # b:   (1, tl)         shrink_sequence bias tile (f32)
    # out: (B, tl)         final output tile
    # acc: (B, tl) f32     scratch accumulator, lives across the K grid axis
    k = pl.program_id(1)

    @pl.when(k == 0)
    def _init():
        acc_ref[...] = jnp.zeros_like(acc_ref)

    # One MXU matmul per grid step; f32 accumulation, no operand upcasts.
    acc_ref[...] += jnp.dot(h_ref[...], w2_ref[...],
                            preferred_element_type=jnp.float32)

    @pl.when(k == pl.num_programs(1) - 1)
    def _finalize():
        out_ref[...] = jnp.tanh(acc_ref[...] + b_ref[...]).astype(out_ref.dtype)


def build_latent_encoder(params, *, seq_len, weight_dtype=jnp.bfloat16,
                         tk_max=2048, tl_max=512):
    """One-time parameter packing; returns a forward(encoding, attention_mask) fn.

    Tuning notes:
      * v7x : keep tl_max <= latent_pad/2 (two TensorCores share the W2 stream);
              double-buffered blocks must fit the 64 MiB-per-TC VMEM.
      * v6e / v5e: prefer tl_max >= latent_pad (single TC, one contiguous L tile).
      * weight_dtype=jnp.bfloat16 halves the dominant HBM stream for f32 callers
        (f32 accumulation is kept); pass jnp.float32 for bit-faithful math.
    """
    H = params["shrink_tokens_b"].shape[0]                 # 100
    D = params["shrink_tokens_w"].shape[1]                 # dim_m
    L = params["shrink_sequence_b"].shape[0]               # latent_size
    K = H * seq_len
    assert params["shrink_sequence_w"].shape == (L, K)

    # Guard tile sizes: lane-dense (multiple-of-128) tiles only.
    tk_max = _round_up(max(tk_max, 128), 128)
    tl_max = _round_up(max(tl_max, 128), 128)

    TK = min(tk_max, _round_up(K, 128))
    K_pad = _round_up(K, TK)
    num_k = K_pad // TK

    l_pad = _round_up(L, 128)
    tl = min(tl_max, l_pad)
    l_pad = _round_up(l_pad, tl)
    num_l = l_pad // tl

    # ---------------- one-time weight packing (never redone per call) --------
    w1t = params["shrink_tokens_w"].T                      # (D, 100)
    b1 = params["shrink_tokens_b"]                         # (100,)

    # PyTorch .view(B, -1) flattens (S, 100) row-major -> flat index s*100 + k,
    # so W2^T of shape (K, L) already matches the flattened h layout directly
    # (no per-position hidden padding needed; only a zero tail pad K -> K_pad).
    w2t = params["shrink_sequence_w"].T.astype(weight_dtype)          # (K, L)
    w2p = jnp.zeros((K_pad, l_pad), weight_dtype).at[:K, :L].set(w2t)
    # (K_pad, l_pad) -> (num_l, num_k, TK, tl): every streamed block is one
    # contiguous DMA burst in HBM.
    w2_blocks = w2p.reshape(num_k, TK, num_l, tl).transpose(2, 0, 1, 3)
    w2_blocks = jax.block_until_ready(w2_blocks)

    b2p = jnp.zeros((1, l_pad), jnp.float32).at[0, :L].set(
        params["shrink_sequence_b"].astype(jnp.float32))

    w_bytes = jnp.dtype(weight_dtype).itemsize

    def forward(encoding, attention_mask=None):
        del attention_mask                                  # unused in 'shrinking'
        B, S, D_in = encoding.shape
        assert S == seq_len and D_in == D
        out_dtype = encoding.dtype

        # shrink_tokens: tiny projection, plain XLA (negligible vs. W2 stream).
        h = jnp.dot(encoding, w1t) + b1                     # (B, S, 100)
        hf = h.reshape(B, K).astype(weight_dtype)           # PyTorch .view(B,-1)
        if K_pad != K:
            hf = jnp.pad(hf, ((0, 0), (0, K_pad - K)))      # zero tail -> exact

        # VMEM budget: double-buffered W2 + h blocks, f32 accumulator, bias, out.
        need = (2 * TK * tl * w_bytes + 2 * B * TK * w_bytes
                + B * tl * 4 + 2 * tl * 4
                + 2 * B * tl * jnp.dtype(out_dtype).itemsize)
        vmem_limit = int(max(32 * 1024 * 1024, 1.5 * need))

        cost = pl.CostEstimate(
            flops=2 * B * K_pad * l_pad,
            transcendentals=B * l_pad,
            bytes_accessed=int(w2_blocks.size * w_bytes
                               + num_l * B * K_pad * w_bytes
                               + B * l_pad * jnp.dtype(out_dtype).itemsize
                               + l_pad * 4),
        )

        out = pl.pallas_call(
            _shrink_sequence_tanh_kernel,
            out_shape=jax.ShapeDtypeStruct((B, l_pad), out_dtype),
            grid=(num_l, num_k),                            # reduction axis last
            in_specs=[
                pl.BlockSpec((B, TK), lambda l, k: (0, k)),                     # h
                pl.BlockSpec((None, None, TK, tl), lambda l, k: (l, k, 0, 0)),  # W2
                pl.BlockSpec((1, tl), lambda l, k: (0, l)),                     # bias
            ],
            out_specs=pl.BlockSpec((B, tl), lambda l, k: (0, l)),
            scratch_shapes=[pltpu.VMEM((B, tl), jnp.float32)],
            compiler_params=pltpu.CompilerParams(
                dimension_semantics=("parallel", "arbitrary"),
                vmem_limit_bytes=vmem_limit,
            ),
            cost_estimate=cost,
        )(hf, w2_blocks, b2p)
        return out[:, :L]

    return forward


def _init_params(key, dim_m, set_input_size, latent_size):
    """Deterministic PyTorch-style Linear init: U(-1/sqrt(fan_in), 1/sqrt(fan_in))."""
    k1, k2, k3, k4 = jax.random.split(key, 4)
    bound1 = 1.0 / jnp.sqrt(dim_m)
    bound2 = 1.0 / jnp.sqrt(100 * set_input_size)
    return {
        "shrink_tokens_w": jax.random.uniform(
            k1, (100, dim_m), jnp.float32, -bound1, bound1),
        "shrink_tokens_b": jax.random.uniform(
            k2, (100,), jnp.float32, -bound1, bound1),
        "shrink_sequence_w": jax.random.uniform(
            k3, (latent_size, 100 * set_input_size), jnp.float32, -bound2, bound2),
        "shrink_sequence_b": jax.random.uniform(
            k4, (latent_size,), jnp.float32, -bound2, bound2),
    }


def _ref_forward(encoding, params):
    """Pure-JAX reference mirroring the PyTorch forward exactly (f32)."""
    h = encoding @ params["shrink_tokens_w"].T + params["shrink_tokens_b"]
    flat = h.reshape(encoding.shape[0], -1)
    out = flat @ params["shrink_sequence_w"].T + params["shrink_sequence_b"]
    return jnp.tanh(out)


if __name__ == "__main__":
    # Small shapes consistent with the module (dim_m must be > 100).  seq=12 and
    # latent=200 exercise the K tail pad (1200 -> 1536 at TK=512) and a real
    # multi-tile grid (num_l=2, num_k=3) in the f32 check below.
    batch, seq, dim_m, latent_size = 2, 12, 128, 200

    key = jax.random.PRNGKey(0)
    kp, kx = jax.random.split(key)
    params = _init_params(kp, dim_m, seq, latent_size)
    encoding = jax.random.normal(kx, (batch, seq, dim_m), jnp.float32)
    attention_mask = jnp.ones((batch, seq), jnp.float32)

    ref = _ref_forward(encoding, params)

    # 1) Exact-path check: f32 weight stream, small tiles -> real (2, 3) grid.
    fwd_f32 = build_latent_encoder(params, seq_len=seq, weight_dtype=jnp.float32,
                                   tk_max=512, tl_max=128)
    out_f32 = jax.block_until_ready(fwd_f32(encoding, attention_mask))
    if not jnp.allclose(out_f32, ref, atol=2e-4, rtol=2e-4):
        max_err = jnp.max(jnp.abs(out_f32 - ref))
        raise AssertionError(f"f32-stream kernel mismatch (max err {max_err})")

    # 2) Production config: bf16-streamed W2/h (halves the dominant HBM stream),
    #    f32 accumulation.  Weight packing was done once in build_latent_encoder.
    fwd_bf16 = build_latent_encoder(params, seq_len=seq)
    out_bf16 = jax.block_until_ready(fwd_bf16(encoding, attention_mask))
    if not jnp.allclose(out_bf16, ref, atol=2e-2, rtol=2e-2):
        max_err = jnp.max(jnp.abs(out_bf16 - ref))
        raise AssertionError(f"bf16-stream kernel mismatch (max err {max_err})")

    print("KERNEL_OK")
</pallas_src>

<mosaic_0001>
module attributes {stable_mosaic.version = 11 : i64} {
  func.func @_shrink_sequence_tanh_kernel(%arg0: i32, %arg1: i32, %arg2: memref<2x512xf32, #tpu.memory_space<vmem>>, %arg3: memref<1x1x512x128xf32, #tpu.memory_space<vmem>>, %arg4: memref<1x128xf32, #tpu.memory_space<vmem>>, %arg5: memref<2x128xf32, #tpu.memory_space<vmem>>, %arg6: memref<2x128xf32, #tpu.memory_space<vmem>>) attributes {dimension_semantics = [#tpu.dimension_semantics<parallel>, #tpu.dimension_semantics<arbitrary>], iteration_bounds = array<i64: 2, 3>, scalar_prefetch = 0 : i64, scratch_operands = 1 : i64, tpu.core_type = #tpu.core_type<tc>, window_params = [{transform_indices = @transform_0, window_bounds = array<i64: 2, 512>}, {transform_indices = @transform_1, window_bounds = array<i64: 1, 1, 512, 128>}, {transform_indices = @transform_2, window_bounds = array<i64: 1, 128>}, {transform_indices = @transform_3, window_bounds = array<i64: 2, 128>}]} {
    %c0_i32 = arith.constant 0 : i32
    %0 = arith.cmpi eq, %arg1, %c0_i32 : i32
    %1 = arith.extui %0 : i1 to i32
    %c0_i32_0 = arith.constant 0 : i32
    %2 = arith.cmpi ne, %1, %c0_i32_0 : i32
    scf.if %2 {
      %cst_11 = arith.constant 0.000000e+00 : f32
      %13 = vector.broadcast %cst_11 : f32 to vector<2x128xf32>
      %c0_12 = arith.constant 0 : index
      %c0_13 = arith.constant 0 : index
      %14 = vector.load %arg6[%c0_12, %c0_13] : memref<2x128xf32, #tpu.memory_space<vmem>>, vector<2x128xf32>
      tpu.vector_store %arg6[%c0_12, %c0_13], %13 {strides = array<i32>} : memref<2x128xf32, #tpu.memory_space<vmem>>, vector<2x128xf32>,
    } else {
    }
    %c0 = arith.constant 0 : index
    %c0_1 = arith.constant 0 : index
    %3 = vector.load %arg6[%c0, %c0_1] : memref<2x128xf32, #tpu.memory_space<vmem>>, vector<2x128xf32>
    %c0_2 = arith.constant 0 : index
    %c0_3 = arith.constant 0 : index
    %4 = vector.load %arg2[%c0_2, %c0_3] : memref<2x512xf32, #tpu.memory_space<vmem>>, vector<2x512xf32>
    %c0_4 = arith.constant 0 : index
    %c0_5 = arith.constant 0 : index
    %c0_6 = arith.constant 0 : index
    %c0_7 = arith.constant 0 : index
    %5 = vector.load %arg3[%c0_4, %c0_5, %c0_6, %c0_7] : memref<1x1x512x128xf32, #tpu.memory_space<vmem>>, vector<1x1x512x128xf32>
    %6 = vector.shape_cast %5 : vector<1x1x512x128xf32> to vector<512x128xf32>
    %cst = arith.constant dense<0.000000e+00> : vector<2x128xf32>
    %7 = tpu.matmul %4, %6, %cst {dimension_numbers = #tpu.dot_dimension_numbers<[1], [0], [0], [1], [0, 0, 1, 1], [], []>} : vector<2x512xf32>, vector<512x128xf32>, vector<2x128xf32> -> vector<2x128xf32>
    %8 = arith.addf %3, %7 : vector<2x128xf32>
    %c0_8 = arith.constant 0 : index
    %c0_9 = arith.constant 0 : index
    %9 = vector.load %arg6[%c0_8, %c0_9] : memref<2x128xf32, #tpu.memory_space<vmem>>, vector<2x128xf32>
    tpu.vector_store %arg6[%c0_8, %c0_9], %8 {strides = array<i32>} : memref<2x128xf32, #tpu.memory_space<vmem>>, vector<2x128xf32>,
    %c2_i32 = arith.constant 2 : i32
    %10 = arith.cmpi eq, %arg1, %c2_i32 : i32
    %11 = arith.extui %10 : i1 to i32
    %c0_i32_10 = arith.constant 0 : i32
    %12 = arith.cmpi ne, %11, %c0_i32_10 : i32
    scf.if %12 {
      %c0_11 = arith.constant 0 : index
      %c0_12 = arith.constant 0 : index
      %13 = vector.load %arg6[%c0_11, %c0_12] : memref<2x128xf32, #tpu.memory_space<vmem>>, vector<2x128xf32>
      %c0_13 = arith.constant 0 : index
      %c0_14 = arith.constant 0 : index
      %14 = vector.load %arg4[%c0_13, %c0_14] : memref<1x128xf32, #tpu.memory_space<vmem>>, vector<1x128xf32>
      %15 = vector.broadcast %14 : vector<1x128xf32> to vector<2x128xf32>
      %16 = arith.addf %13, %15 : vector<2x128xf32>
      %17 = math.tanh %16 : vector<2x128xf32>
      %c0_15 = arith.constant 0 : index
      %c0_16 = arith.constant 0 : index
      %18 = vector.load %arg5[%c0_15, %c0_16] : memref<2x128xf32, #tpu.memory_space<vmem>>, vector<2x128xf32>
      tpu.vector_store %arg5[%c0_15, %c0_16], %17 {strides = array<i32>} : memref<2x128xf32, #tpu.memory_space<vmem>>, vector<2x128xf32>,
    } else {
    }
    return
  }
  func.func @transform_0(%arg0: i32, %arg1: i32) -> (i32, i32) {
    %c0_i32 = arith.constant 0 : i32
    %c0_i32_0 = arith.constant 0 : i32
    return %c0_i32, %arg1 : i32, i32
  }
  func.func @transform_1(%arg0: i32, %arg1: i32) -> (i32, i32, i32, i32) {
    %c0_i32 = arith.constant 0 : i32
    %c0_i32_0 = arith.constant 0 : i32
    %c0_i32_1 = arith.constant 0 : i32
    return %arg0, %arg1, %c0_i32, %c0_i32_0 : i32, i32, i32, i32
  }
  func.func @transform_2(%arg0: i32, %arg1: i32) -> (i32, i32) {
    %c0_i32 = arith.constant 0 : i32
    %c0_i32_0 = arith.constant 0 : i32
    return %c0_i32, %arg0 : i32, i32
  }
  func.func @transform_3(%arg0: i32, %arg1: i32) -> (i32, i32) {
    %c0_i32 = arith.constant 0 : i32
    %c0_i32_0 = arith.constant 0 : i32
    return %c0_i32, %arg0 : i32, i32
  }
}

</mosaic_0001>

<bundles_post_ra>
// kernel: tpu_custom_call.1
= control target key start
LH: loop header
LB: loop body
LE: loop exit
PB: predicated region body
PF: predicated region fallthrough
CT: control target
= control target key end

     0   :  { %s1557_s0 = inlined_call_operand.hbm [shape: f32[2,1536], index: 0, kind: input, shape index: {}]   ;;  %s1558_s1 = inlined_call_operand.hbm [shape: f32[2,3,512,128], index: 1, kind: input, shape index: {}]   ;;  %s1559_s2 = inlined_call_operand.hbm [shape: f32[1,256], index: 2, kind: input, shape index: {}]   ;;  %s1560_s3 = inlined_call_operand.hbm [shape: f32[2,256], index: 3, kind: output, shape index: {}]  }
   0x1   :  { %1570 = sst [smem:[#allocation20_spill]] %s1557_s0 }
   0x2   :  { %1571 = sst [smem:[#allocation21_spill]] %s1558_s1 }
   0x3   :  { %1572 = sst [smem:[#allocation22_spill]] %s1559_s2 }
   0x4   :  { %1573 = sst [smem:[#allocation23_spill]] %s1560_s3 }
   0x5   :  { %8 = vsyncpa [#allocation4], 0 }
   0x6   :  { %10 = vsyncpa [#allocation4 + $0x1], 0 }
   0x7   :  { %11 = vsyncpa [#allocation7], 0 }
   0x8   :  { %13 = vsyncpa [#allocation7 + $0x1], 0 }
   0x9   :  { %14 = vsyncpa [#allocation5], 0 }
   0xa   :  { %16 = vsyncpa [#allocation5 + $0x1], 0  ;;  %s1166_s12 = smov 0   ;;  %s1168_s13 = smov 0  }
   0xb   :  { %s1170_s14 = smov 0   ;;  %s1172_s15 = smov 0  }
   0xc   :  { %s1174_s16 = smov 0   ;;  %s1176_s17 = smov 0  }
   0xd   :  { %s1178_s18 = smov 0   ;;  %s1180_s19 = smov 0  }
   0xe   :  { %s1182_s20 = smov 0   ;;  %s1184_s21 = smov 0  }
   0xf   :  { %s1186_s22 = smov 0   ;;  %s1188_s23 = smov 0  }
  0x10   :  { %s1190_s24 = smov 0   ;;  %s1192_s25 = smov 0  }
  0x11 LB: > { %1574 = sst [smem:[#allocation14_spill]] %s1084_s12  ;;  %s31_s26 = sadd.s32 1, %s1128_s23  ;;  %s1136_s25 = sphi %s1192_s25, %s22_s25   ;;  %s1132_s24 = sphi %s1190_s24, %s1623_s24   ;;  %s1128_s23 = sphi %s1188_s23, %s1622_s23   ;;  %s1124_s22 = sphi %s1186_s22, %s1621_s22   ;;  %s1120_s21 = sphi %s1184_s21, %s1620_s21   ;;  %s1116_s20 = sphi %s1182_s20, %s1619_s20   ;;  %s1112_s19 = sphi %s1180_s19, %s1618_s19   ;;  %s1108_s18 = sphi %s1178_s18, %s1617_s18   ;;  %s1104_s17 = sphi %s1176_s17, %s1616_s17   ;;  %s1100_s16 = sphi %s1174_s16, %s1615_s16   ;;  %s1096_s15 = sphi %s1172_s15, %s1614_s15   ;;  %s1092_s14 = sphi %s1170_s14, %s1613_s14   ;;  %s1088_s13 = sphi %s1168_s13, %s1612_s13   ;;  %s1084_s12 = sphi %s1166_s12, %s1608_s12  }
  0x12   : > { %1575 = sst [smem:[#allocation15_spill]] %s1088_s13  ;;  %s34_s27 = sadd.s32 1, %s1132_s24 }
  0x13   : > { %1576 = sst [smem:[#allocation16_spill]] %s1120_s21  ;;  %p32_p0 = scmp.ge.s32.totalorder %s31_s26, 3 }
  0x14   : > { %1577 = sst [smem:[#allocation17_spill]] %s1124_s22  ;;  %p1566_p1 = scmp.eq.s32.totalorder %s1136_s25, 0 }
  0x15   : > { %s69_s28 = sadd.s32 1, %s1104_s17  ;;  %p76_p2 = scmp.ne.s32.totalorder %s1104_s17, %s1100_s16 }
  0x16   : > { %s1625_s26 = smov (%p32_p0, %s31_s26), 0  ;;  %s1627_s27 = smov (!%p32_p0, %s34_s27), %s1132_s24 }
  0x17   : > { %1578 = sst [smem:[#allocation18_spill]] %s1625_s26  ;;  %s1247_s29 = ssub.s32 %s1128_s23, %s1625_s26 }
  0x18   : > { %p1251_p3 = por %p76_p2, %p1566_p1  ;;  %p36_p4 = scmp.ge.s32.totalorder %s1627_s27, 2 }
  0x19   : > { %p82_p5 = scmp.ne.s32.totalorder %s1100_s16, %s1096_s15  ;;  %p1567_p6 = scmp.lt.s32.totalorder %s1136_s25, 6 }
  0x1a   : > { %s1629_s27 = smov (%p36_p4, %s1627_s27), 0  ;;  %s177_s4 = sand.u32 1, %s1136_s25  }
  0x1b   : > { %1580 = sst [smem:[#allocation19_spill]] %s1629_s27  ;;  %s179_s5 = sand.u32 1, %s1104_s17  }
  0x1c   : > { %s1264_s6 = ssub.s32 %s1132_s24, %s1629_s27  ;;  %s670_s8 = sshll.u32 %s179_s5, 9 }
  0x1d   : > { %s66_s7 = sor.u32 %s1264_s6, %s1247_s29  ;;  %s671_s9 = sshll.u32 %s1128_s23, 6 }
  0x1e   : > { %p67_p7 = scmp.eq.s32.totalorder %s66_s7, 0  ;;  %s756_s10 = smul.u32 192, %s1132_s24 }
  0x1f   : > { %s181_s3 = scalar_lea.vmem [#allocation6], %s670_s8  ;;  %s1581_s1 = sld [smem:[#allocation21_spill]] }
  0x20   : > { %s1271_s11 = scalar_select %p67_p7, %s1104_s17, %s69_s28  }
  0x21   : > { %s187_s26 = sadd.s32 %s756_s10, %s671_s9  ;;  %s190_s22 = sshll.u32 %s181_s3, 4  ;;  %s191_s22 = int_to_ptr.vmem [resolvable:$true] %s190_s22 }
  0x22   : > { %s672_s21 = sshll.u32 %s187_s26, 7  ;;  %p1280_p8 = pnand %p1567_p6, %p1251_p3 }
  0x23   : > { %p674_p9 = scmp.ge.s32.totalorder %s1136_s25, 1  ;;  %s1285_s5 = scalar_lea.sflag [#allocation7], %s177_s4 }
  0x24   : > { %p902_p10 = pneg %p1280_p8  ;;  %s913_s28 = scalar_lea.vmem %s191_s22, 8192 }
  0x25   : > { %s189_s13 = scalar_lea.hbm %s1581_s1, %s672_s21  ;;  %p914_p11 = scmp.ne.s32.totalorder %s191_s22, %s913_s28 }
  0x26   : > { %s1138_s3 = smov [#allocation6]  }
  0x27   : > { %p916_p12 = pnand %p914_p11, %p902_p10  ;;  %s918_s26 = sshll.u32 %s1138_s3, 4  ;;  %s919_s26 = int_to_ptr.vmem [resolvable:$false] %s918_s26 }
  0x28   : > { %s920_s2 = scalar_lea.vmem %s919_s26, 16384  ;;  %p921_p0 = scmp.lt.s32.totalorder %s191_s22, %s919_s26 }
  0x29   : > { %p917_p13 = pneg %p916_p12  ;;  %p922_p2 = scmp.lt.s32.totalorder %s920_s2, %s913_s28 }
  0x2b   : > { %p923_p3 = por %p922_p2, %p921_p0 }
  0x2d   : > { %p924_p4 = pnand %p923_p3, %p917_p13 }
  0x2f   : > { %927 = shalt.err (!%p924_p4)
}
  0x30   : > { %s1139_s12 = smov 128   ;;  %s1140_s21 = smov 8  }
  0x31   : > { %771 = dma.hbm_to_vmem [thread:$0]  (!%p1280_p8), %s189_s13, 8192, %s191_s22, %s1285_s5, %s1139_s12, %s1139_s12, %s1140_s21  }
  0x32   : > { %p215_p7 = scmp.lt.s32.totalorder %s1136_s25, 7  ;;  %s1300_s4 = sadd.s32 4294967295, %s1136_s25  }
  0x33   : > { %p39_p11 = scmp.eq.s32.totalorder %s1247_s29, 0  ;;  %s41_s7 = sadd.s32 1, %s1116_s20 }
  0x34   : > { %p1295_p10 = pnand %p674_p9, %p215_p7  ;;  %p48_p12 = scmp.ne.s32.totalorder %s1116_s20, %s1112_s19 }
  0x35   : > { %s1307_s8 = scalar_select %p39_p11, %s1116_s20, %s41_s7  }
  0x36   : > { %p50_p13 = por %p1566_p1, %p48_p12  ;;  %p54_p8 = scmp.ne.s32.totalorder %s1112_s19, %s1108_s18 }
  0x37   : > { %p1565_p0 = scmp.eq.s32.totalorder %s1300_s4, 0  ;;  %s158_s13 = sand.u32 1, %s1116_s20  }
  0x38   : > { %s667_s22 = sshll.u32 %s158_s13, 3  ;;  %s685_s9 = sshll.u32 %s1128_s23, 7 }
  0x39   : > { %p1317_p9 = por %p1565_p0, %p54_p8  ;;  %p1326_p2 = por %p82_p5, %p1565_p0 }
  0x3a   : > { %s1586_s0 = sld [smem:[#allocation20_spill]]  ;;  %s162_s18 = scalar_lea.vmem [#allocation3], %s667_s22 }
  0x3b   : > { %s170_s26 = sshll.u32 %s162_s18, 4  ;;  %p1336_p3 = pnand %p1567_p6, %p50_p13  ;;  %s171_s26 = int_to_ptr.vmem [resolvable:$true] %s170_s26 }
  0x3c   : > { %s159_s12 = scalar_lea.sflag [#allocation4], %s158_s13  ;;  %s941_s15 = scalar_lea.vmem %s171_s26, 128 }
  0x3d   : > { %p930_p5 = pneg %p1336_p3  ;;  %p942_p4 = scmp.ne.s32.totalorder %s171_s26, %s941_s15 }
  0x3e   : > { %s1141_s21 = smov [#allocation3]  }
  0x3f   : > { %p944_p7 = pnand %p942_p4, %p930_p5  ;;  %s946_s7 = sshll.u32 %s1141_s21, 4  ;;  %s947_s7 = int_to_ptr.vmem [resolvable:$false] %s946_s7 }
  0x40   : > { %s168_s3 = scalar_lea.hbm %s1586_s0, %s685_s9  ;;  %s948_s9 = scalar_lea.vmem %s947_s7, 256 }
  0x41   : > { %p945_p11 = pneg %p944_p7  ;;  %p949_p12 = scmp.lt.s32.totalorder %s171_s26, %s947_s7 }
  0x42   : > { %p950_p8 = scmp.lt.s32.totalorder %s948_s9, %s941_s15 }
  0x44   : > { %p951_p0 = por %p950_p8, %p949_p12 }
  0x46   : > { %p952_p1 = pnand %p951_p0, %p945_p11 }
  0x48   : > { %955 = shalt.err (!%p952_p1)
}
  0x49   : > { %s1588_s13 = sld [smem:[#allocation15_spill]]  ;;  %s664_s10 = sadd.s32 4294967294, %s1136_s25  }
  0x4a   : > { %s1589_s22 = sld [smem:[#allocation14_spill]]  ;;  %p93_p13 = scmp.eq.s32.totalorder %s1264_s6, 0 }
  0x4b   : > { %768 = dma.hbm_to_vmem [thread:$0]  (!%p1336_p3), %s168_s3, 128, %s171_s26, %s159_s12  }
  0x4c   : > { %s95_s28 = sadd.s32 1, %s1092_s14  ;;  %p1590_p5 = scmp.eq.s32.totalorder %s1136_s25, 0 }
  0x4d   : > { %s1352_s18 = scalar_select %p93_p13, %s1092_s14, %s95_s28  }
  0x4e   : > { %p1591_p7 = scmp.eq.s32.totalorder %s1300_s4, 0  ;;  %p132_p12 = scmp.eq.s32.totalorder %s1300_s4, 5 }
  0x4f   : > { %p102_p1 = scmp.ne.s32.totalorder %s1092_s14, %s1588_s13  ;;  %p138_p8 = scmp.eq.s32.totalorder %s664_s10, 5 }
  0x50   : > { %p108_p0 = scmp.ne.s32.totalorder %s1588_s13, %s1589_s22  ;;  %s202_s15 = sand.u32 1, %s1092_s14  }
  0x51   : > { %p104_p4 = por %p102_p1, %p1590_p5  ;;  %s673_s21 = sshll.u32 %s1132_s24, 4 }
  0x52   : > { %p1358_p11 = por %p108_p0, %p1591_p7  ;;  %p1365_p3 = por %p132_p12, %p102_p1 }
  0x53   : > { %p1369_p6 = por %p138_p8, %p108_p0  ;;  %s1595_s7 = sld [smem:[#allocation22_spill]] }
  0x54   : > { %s1592_s2 = scalar_select %p1358_p11, 1, 0 }
  0x55   : > { %s1593_s3 = scalar_select %p1365_p3, 1, 0 }
  0x56   : > { %s1594_s6 = scalar_select %p1369_p6, 1, 0 }
  0x57   : > { %s203_s13 = scalar_lea.vmem [#allocation8], %s202_s15  ;;  %p1596_p13 = scmp.lt.s32.totalorder %s1136_s25, 6 }
  0x58   : > { %s210_s22 = sshll.u32 %s203_s13, 4  ;;  %s1142_s0 = smov [#allocation8]   ;;  %s211_s22 = int_to_ptr.vmem [resolvable:$true] %s210_s22 }
  0x59   : > { %s208_s9 = scalar_lea.hbm %s1595_s7, %s673_s21  ;;  %p1378_p5 = pnand %p1596_p13, %p104_p4 }
  0x5a   : > { %s969_s10 = scalar_lea.vmem %s211_s22, 16  ;;  %s974_s1 = sshll.u32 %s1142_s0, 4  ;;  %s975_s1 = int_to_ptr.vmem [resolvable:$false] %s974_s1 }
  0x5b   : > { %p958_p1 = pneg %p1378_p5  ;;  %p970_p0 = scmp.ne.s32.totalorder %s211_s22, %s969_s10 }
  0x5c   : > { %s976_s26 = scalar_lea.vmem %s975_s1, 32  ;;  %p977_p8 = scmp.lt.s32.totalorder %s211_s22, %s975_s1 }
  0x5d   : > { %p972_p7 = pnand %p970_p0, %p958_p1  ;;  %p978_p6 = scmp.lt.s32.totalorder %s976_s26, %s969_s10 }
  0x5f   : > { %p973_p12 = pneg %p972_p7  ;;  %p979_p3 = por %p978_p6, %p977_p8 }
  0x61   : > { %p980_p11 = pnand %p979_p3, %p973_p12 }
  0x63   : > { %983 = shalt.err (!%p980_p11)
}
  0x64   : > { %774 = dma.hbm_to_vmem [thread:$0]  (!%p1378_p5), %s208_s9, 16, %s211_s22, %s1285_s5  }
  0x65   : > { %219 = sbr.rel (%p1295_p10) target bundleno = 423 (0x1a7), region = 32  ;;  %s221_s15 = sand.u32 (!%p1295_p10), 1, %s1112_s19  }
  0x66   : > { %s1390_s21 = sshll.u32 (!%p1295_p10), %s221_s15, 3  ;;  %s222_s0 = scalar_lea.sflag (!%p1295_p10), [#allocation4], %s221_s15 }
  0x67   : > { %s225_s12 = scalar_lea.vmem (!%p1295_p10), [#allocation3], %s1390_s21 }
  0x6a   : > { %1067 = dma.done.wait (%p1317_p9), %s222_s0, 128  }
  0x6b   : > { %1069 = vsyncadd (%p1317_p9), %s222_s0, 4294967168  ;;  %s230_s1 = sand.u32 1, %s1300_s4   ;;  %s232_s5 = sand.u32 1, %s1100_s16  }
  0x6c   : > { %s676_s30 = sshll.u32 %s232_s5, 9  ;;  %s231_s7 = scalar_lea.sflag [#allocation7], %s230_s1 }
  0x6d   : > { %s1399_s9 = scalar_lea.vmem [#allocation6], %s676_s30 }
  0x6e   : > { %1071 = dma.done.wait (%p1326_p2), %s231_s7, 8192  }
  0x6f   : > { %1073 = vsyncadd (%p1326_p2), %s231_s7, 4294959104  ;;  %s1598_s13 = sld [smem:[#allocation15_spill]]  ;;  %p1599_p6 = scmp.ne.s32.totalorder %s1592_s2, 0 }
  0x75   : > { %s1406_s22 = sand.u32 1, %s1598_s13  }
  0x76   : > { %s242_s27 = scalar_lea.vmem [#allocation8], %s1406_s22 }
  0x77   : > { %1075 = dma.done.wait (%p1599_p6), %s231_s7, 16  }
  0x78   : > { %1077 = vsyncadd (%p1599_p6), %s231_s7, 4294967280  ;;  %s677_s4 = sshll.u32 %s1406_s22, 1  ;;  %s1600_s10 = sld [smem:[#allocation16_spill]] }
  0x79   : > { %s1414_s28 = scalar_lea.vmem [#allocation9], %s677_s4 }
  0x7e   : > { %p678_p10 = scmp.ne.s32.totalorder %s1600_s10, 0 }
  0x80   : > { %278 = sbr.rel (%p678_p10) target bundleno = 135 (0x87), region = 48 }
  0x85   : > { %v1143_v0 = vmov 0.0  }
  0x86   : > { %279 = vst [vmem:[#allocation2] sm:$0x3] %v1143_v0 }
  0x87 PF: > { %v313_v1 = vld [vmem:[%s1399_s9 + $0xf8] sm:$0xff]  ;;  %v312_v5 = vld [vmem:[%s1399_s9 + $0xf0] sm:$0xff]  ;;  %v311_v9 = vld [vmem:[%s1399_s9 + $0xe8] sm:$0xff]  ;;  %v1144_v31 = vmov 1983009808   ;;  %v351_v33 = vlaneseq  ;;  %s1601_s29 = sld [smem:[#allocation16_spill]] }
  0x88   : > { %v345_v2 = vld [vmem:[%s1399_s9 + $0x1f8] sm:$0xff]  ;;  %686 = vmatprep.subr.mxu0 %v313_v1  ;;  %v344_v6 = vld [vmem:[%s1399_s9 + $0x1f0] sm:$0xff]  ;;  %v343_v10 = vld [vmem:[%s1399_s9 + $0x1e8] sm:$0xff]  ;;  %v349_v32 = vunpack.c.l.s4 %v1144_v31 }
  0x89   : > { %v297_v3 = vld [vmem:[%s1399_s9 + $0x78] sm:$0xff]  ;;  %721 = vmatprep.subr.mxu1 %v345_v2  ;;  %v296_v7 = vld [vmem:[%s1399_s9 + $0x70] sm:$0xff]  ;;  %v295_v11 = vld [vmem:[%s1399_s9 + $0x68] sm:$0xff]  ;;  %v352_v43 = vshrl.u32 %v351_v33, 7 }
  0x8a   : > { %v329_v4 = vld [vmem:[%s1399_s9 + $0x178] sm:$0xff]  ;;  %687 = vmatpush3.msra.mxu0 %v297_v3  ;;  %v328_v8 = vld [vmem:[%s1399_s9 + $0x170] sm:$0xff]  ;;  %v327_v12 = vld [vmem:[%s1399_s9 + $0x168] sm:$0xff]  ;;  %v350_v42 = vunpack.c.0.s8 %v349_v32 }
  0x8b   : > { %722 = vmatpush3.msra.mxu1 %v329_v4  ;;  %688 = vmatprep.subr.mxu0 %v312_v5  ;;  %v310_v13 = vld [vmem:[%s1399_s9 + $0xe0] sm:$0xff]  ;;  %v309_v17 = vld [vmem:[%s1399_s9 + $0xd8] sm:$0xff]  ;;  %v308_v21 = vld [vmem:[%s1399_s9 + $0xd0] sm:$0xff] }
  0x8c   : > { %723 = vmatprep.subr.mxu1 %v344_v6  ;;  %689 = vmatpush3.msra.mxu0 %v296_v7  ;;  %v342_v14 = vld [vmem:[%s1399_s9 + $0x1e0] sm:$0xff]  ;;  %v341_v18 = vld [vmem:[%s1399_s9 + $0x1d8] sm:$0xff]  ;;  %v340_v22 = vld [vmem:[%s1399_s9 + $0x1d0] sm:$0xff]  ;;  %v353_v52 = vsub.s32 %v350_v42, %v352_v43 }
  0x8d   : > { %724 = vmatpush3.msra.mxu1 %v328_v8  ;;  %690 = vmatprep.subr.mxu0 %v311_v9  ;;  %v294_v15 = vld [vmem:[%s1399_s9 + $0x60] sm:$0xff]  ;;  %v293_v19 = vld [vmem:[%s1399_s9 + $0x58] sm:$0xff]  ;;  %v292_v23 = vld [vmem:[%s1399_s9 + $0x50] sm:$0xff]  ;;  %p679_p9 = scmp.ne.s32.totalorder %s1601_s29, 2 }
  0x8e   : > { %725 = vmatprep.subr.mxu1 %v343_v10  ;;  %v326_v16 = vld [vmem:[%s1399_s9 + $0x160] sm:$0xff]  ;;  %691 = vmatpush3.msra.mxu0 %v295_v11  ;;  %v325_v20 = vld [vmem:[%s1399_s9 + $0x158] sm:$0xff]  ;;  %v324_v24 = vld [vmem:[%s1399_s9 + $0x150] sm:$0xff] }
  0x8f   : > { %726 = vmatpush3.msra.mxu1 %v327_v12  ;;  %692 = vmatprep.subr.mxu0 %v310_v13  ;;  %v307_v25 = vld [vmem:[%s1399_s9 + $0xc8] sm:$0xff]  ;;  %v306_v29 = vld [vmem:[%s1399_s9 + $0xc0] sm:$0xff]  ;;  %v305_v36 = vld [vmem:[%s1399_s9 + $0xb8] sm:$0xff] }
  0x90   : > { %727 = vmatprep.subr.mxu1 %v342_v14  ;;  %693 = vmatpush3.msra.mxu0 %v294_v15  ;;  %v339_v26 = vld [vmem:[%s1399_s9 + $0x1c8] sm:$0xff]  ;;  %v338_v30 = vld [vmem:[%s1399_s9 + $0x1c0] sm:$0xff]  ;;  %v337_v37 = vld [vmem:[%s1399_s9 + $0x1b8] sm:$0xff] }
  0x91   : > { %728 = vmatpush3.msra.mxu1 %v326_v16  ;;  %694 = vmatprep.subr.mxu0 %v309_v17  ;;  %v291_v27 = vld [vmem:[%s1399_s9 + $0x48] sm:$0xff]  ;;  %v290_v34 = vld [vmem:[%s1399_s9 + $0x40] sm:$0xff]  ;;  %v289_v38 = vld [vmem:[%s1399_s9 + $0x38] sm:$0xff] }
  0x92   : > { %729 = vmatprep.subr.mxu1 %v341_v18  ;;  %695 = vmatpush3.msra.mxu0 %v293_v19  ;;  %v323_v28 = vld [vmem:[%s1399_s9 + $0x148] sm:$0xff]  ;;  %v322_v35 = vld [vmem:[%s1399_s9 + $0x140] sm:$0xff]  ;;  %v321_v39 = vld [vmem:[%s1399_s9 + $0x138] sm:$0xff] }
  0x93   : > { %730 = vmatpush3.msra.mxu1 %v325_v20  ;;  %696 = vmatprep.subr.mxu0 %v308_v21  ;;  %v304_v40 = vld [vmem:[%s1399_s9 + $0xb0] sm:$0xff]  ;;  %v303_v46 = vld [vmem:[%s1399_s9 + $0xa8] sm:$0xff]  ;;  %v302_v50 = vld [vmem:[%s1399_s9 + $0xa0] sm:$0xff] }
  0x94   : > { %731 = vmatprep.subr.mxu1 %v340_v22  ;;  %697 = vmatpush3.msra.mxu0 %v292_v23  ;;  %v336_v41 = vld [vmem:[%s1399_s9 + $0x1b0] sm:$0xff]  ;;  %v335_v47 = vld [vmem:[%s1399_s9 + $0x1a8] sm:$0xff]  ;;  %v334_v51 = vld [vmem:[%s1399_s9 + $0x1a0] sm:$0xff] }
  0x95   : > { %732 = vmatpush3.msra.mxu1 %v324_v24  ;;  %698 = vmatprep.subr.mxu0 %v307_v25  ;;  %v288_v44 = vld [vmem:[%s1399_s9 + $0x30] sm:$0xff]  ;;  %v287_v48 = vld [vmem:[%s1399_s9 + $0x28] sm:$0xff]  ;;  %v286_v53 = vld [vmem:[%s1399_s9 + $0x20] sm:$0xff] }
  0x96   : > { %733 = vmatprep.subr.mxu1 %v339_v26  ;;  %699 = vmatpush3.msra.mxu0 %v291_v27  ;;  %v320_v45 = vld [vmem:[%s1399_s9 + $0x130] sm:$0xff]  ;;  %v319_v49 = vld [vmem:[%s1399_s9 + $0x128] sm:$0xff]  ;;  %v318_v54 = vld [vmem:[%s1399_s9 + $0x120] sm:$0xff] }
  0x97   : > { %734 = vmatpush3.msra.mxu1 %v323_v28  ;;  %700 = vmatprep.subr.mxu0 %v306_v29  ;;  %v281_v55 = vld [vmem:[%s225_s12] sm:$0xff]  ;;  %v299_v3 = vld [vmem:[%s1399_s9 + $0x88] sm:$0xff]  ;;  %v298_v7 = vld [vmem:[%s1399_s9 + $0x80] sm:$0xff] }
  0x98   : > { %735 = vmatprep.subr.mxu1 %v338_v30  ;;  %701 = vmatpush3.msra.mxu0 %v290_v34  ;;  %v301_v56 = vld [vmem:[%s1399_s9 + $0x98] sm:$0xff]  ;;  %v347_v58 = vcombine.high %v281_v55, %v281_v55  ;;  %v300_v61 = vld [vmem:[%s1399_s9 + $0x90] sm:$0xff]  ;;  %v354_v63 = vrot.slane %v281_v55, %v353_v52  ;;  %v331_v4 = vld [vmem:[%s1399_s9 + $0x188] sm:$0xff] }
  0x99   : > { %736 = vmatpush3.msra.mxu1 %v322_v35  ;;  %702 = vmatprep.subr.mxu0 %v305_v36  ;;  %v333_v57 = vld [vmem:[%s1399_s9 + $0x198] sm:$0xff]  ;;  %v332_v62 = vld [vmem:[%s1399_s9 + $0x190] sm:$0xff]  ;;  %v283_v5 = vld [vmem:[%s1399_s9 + $0x8] sm:$0xff] }
  0x9a   : > { %737 = vmatprep.subr.mxu1 %v337_v37  ;;  %703 = vmatpush3.msra.mxu0 %v289_v38  ;;  %v285_v59 = vld [vmem:[%s1399_s9 + $0x18] sm:$0xff]  ;;  %v284_v0 = vld [vmem:[%s1399_s9 + $0x10] sm:$0xff]  ;;  %v361_v2 = vrot.slane %v347_v58, %v353_v52  ;;  %v315_v6 = vld [vmem:[%s1399_s9 + $0x108] sm:$0xff]  ;;  %v362_v9 = vcombine.high %v354_v63, %v354_v63 }
  0x9b   : > { %738 = vmatpush3.msra.mxu1 %v321_v39  ;;  %704 = vmatprep.subr.mxu0 %v304_v40  ;;  %v317_v60 = vld [vmem:[%s1399_s9 + $0x118] sm:$0xff]  ;;  %v316_v1 = vld [vmem:[%s1399_s9 + $0x110] sm:$0xff]  ;;  %v330_v8 = vld [vmem:[%s1399_s9 + $0x180] sm:$0xff] }
  0x9c   : > { %739 = vmatprep.subr.mxu1 %v336_v41  ;;  %705 = vmatpush3.msra.mxu0 %v288_v44  ;;  %v282_v10 = vld [vmem:[%s1399_s9] sm:$0xff]  ;;  %v363_v11 = vcombine.high %v361_v2, %v361_v2  ;;  %v280_v19 = vld [vmem:[#allocation2] sm:$0x3] }
  0x9d   : > { %740 = vmatpush3.msra.mxu1 %v320_v45  ;;  %706 = vmatprep.subr.mxu0 %v303_v46  ;;  %v314_v12 = vld [vmem:[%s1399_s9 + $0x100] sm:$0xff] }
  0x9e   : > { %741 = vmatprep.subr.mxu1 %v335_v47  ;;  %707 = vmatpush3.msra.mxu0 %v287_v48 }
  0x9f   : > { %742 = vmatpush3.msra.mxu1 %v319_v49  ;;  %708 = vmatprep.subr.mxu0 %v302_v50 }
  0xa0   : > { %743 = vmatprep.subr.mxu1 %v334_v51  ;;  %709 = vmatpush3.msra.mxu0 %v286_v53 }
  0xa1   : > { %744 = vmatpush3.msra.mxu1 %v318_v54  ;;  %710 = vmatprep.subr.mxu0 %v301_v56 }
  0xa2   : > { %745 = vmatprep.subr.mxu1 %v333_v57  ;;  %711 = vmatpush3.msra.mxu0 %v285_v59 }
  0xa3   : > { %746 = vmatpush3.msra.mxu1 %v317_v60  ;;  %712 = vmatprep.subr.mxu0 %v300_v61 }
  0xa4   : > { %747 = vmatprep.subr.mxu1 %v332_v62  ;;  %713 = vmatpush3.msra.mxu0 %v284_v0 }
  0xa5   : > { %748 = vmatpush3.msra.mxu1 %v316_v1  ;;  %714 = vmatprep.subr.mxu0 %v299_v3 }
  0xa6   : > { %749 = vmatprep.subr.mxu1 %v331_v4  ;;  %715 = vmatpush3.msra.mxu0 %v283_v5 }
  0xa7   : > { %750 = vmatpush3.msra.mxu1 %v315_v6  ;;  %716 = vmatprep.subr.mxu0 %v298_v7 }
  0xa8   : > { %751 = vmatprep.subr.mxu1 %v330_v8  ;;  %717 = vmatpush3.msra.mxu0 %v282_v10 }
  0xa9   : > { %432 = vmatprep.mubr.f32.mxu0 %v362_v9  ;;  %752 = vmatpush3.msra.mxu1 %v314_v12 }
  0xaa   : > { %502 = vmatprep.mubr.f32.mxu1 %v363_v11  ;;  %433 = vmatmul.mubr.f32.vlgmr.msra.gmra.mxu0 %v354_v63 }
  0xab   : > { %503 = vmatmul.mubr.f32.vlgmr.msra.gmra.mxu1 %v361_v2 }
 0x16a   : > { %v718_v13 = vpop.f32.mrf.mxu0 }
 0x16b   : > { %v753_v14 = vpop.f32.mrf.mxu1 }
 0x16c   : > { %v719_v15 = vpop.f32.mrf.mxu0 }
 0x16d   : > { %v754_v16 = vpop.f32.mrf.mxu1  ;;  %v720_v17 = vadd.f32 %v719_v15, %v718_v13 }
 0x16e   : > { %v755_v18 = vadd.f32 %v754_v16, %v753_v14 }
 0x170   : > { %v505_v20 = vadd.f32 %v755_v18, %v720_v17  ;;  %513 = sbr.rel (%p679_p9) target bundleno = 397 (0x18d), region = 52 }
 0x172   : > { %v508_v21 = vadd.f32 %v505_v20, %v280_v19 }
 0x174   : > { %509 = vst [vmem:[#allocation2] sm:$0x3] %v508_v21 }
 0x175   : > { %v680_v23 = vld [vmem:[%s242_s27] ss:$0 sm:$0xff] }
 0x17b   : > { %v514_v22 = vld [vmem:[#allocation2] sm:$0x3] }
 0x17c   : > { %v522_v24 = vadd.f32 %v680_v23, %v514_v22 }
 0x17e   : > { %898 = vtanh.f32 %v522_v24 }
 0x18b   : > { %v899_v25 = vpop.eup %898 }
 0x18c   : > { %524 = vst [vmem:[%s1414_s28] sm:$0x3] %v899_v25 }
 0x18d PF: > { %s1602_s2 = sld [smem:[#allocation17_spill]]  ;;  %s539_s1 = sshll.u32 %s1414_s28, 4  ;;  %s540_s1 = int_to_ptr.vmem [resolvable:$true] %s539_s1 }
 0x18e   : > { %s1603_s0 = sld [smem:[#allocation23_spill]]  ;;  %s526_s5 = scalar_lea.sflag [#allocation5], %s1406_s22 }
 0x18f   : > { %s984_s30 = scalar_lea.vmem %s540_s1, 32  ;;  %p1604_p4 = scmp.ne.s32.totalorder %s1593_s3, 0 }
 0x190   : > { %p985_p2 = scmp.ne.s32.totalorder %s540_s1, %s984_s30  ;;  %s1145_s7 = smov [#allocation9]  }
 0x191   : > { %s988_s9 = sshll.u32 %s1145_s7, 4  ;;  %s989_s9 = int_to_ptr.vmem [resolvable:$false] %s988_s9 }
 0x192   : > { %p986_p11 = pnand %p985_p2, %p1604_p4  ;;  %s990_s13 = scalar_lea.vmem %s989_s9, 64 }
 0x193   : > { %s682_s26 = sshll.u32 %s1602_s2, 5  ;;  %p991_p13 = scmp.lt.s32.totalorder %s540_s1, %s989_s9 }
 0x194   : > { %s537_s12 = scalar_lea.hbm %s1603_s0, %s682_s26  ;;  %p987_p3 = pneg %p986_p11 }
 0x195   : > { %p992_p5 = scmp.lt.s32.totalorder %s990_s13, %s984_s30 }
 0x197   : > { %p993_p1 = por %p992_p5, %p991_p13 }
 0x199   : > { %p994_p0 = pnand %p993_p1, %p987_p3 }
 0x19b   : > { %997 = shalt.err (!%p994_p0)
}
 0x19c   : > { %s998_s27 = scalar_lea.hbm %s537_s12, 32  ;;  %s1002_s28 = scalar_lea.hbm %s1603_s0, 64 }
 0x19d   : > { %p999_p7 = scmp.ne.s32.totalorder %s537_s12, %s998_s27  ;;  %p1003_p6 = scmp.lt.s32.totalorder %s537_s12, %s1603_s0 }
 0x19e   : > { %p1004_p10 = scmp.lt.s32.totalorder %s1002_s28, %s998_s27 }
 0x19f   : > { %p1000_p12 = pnand %p999_p7, %p1604_p4 }
 0x1a0   : > { %p1005_p9 = por %p1004_p10, %p1003_p6 }
 0x1a1   : > { %p1001_p8 = pneg %p1000_p12 }
 0x1a3   : > { %p1006_p2 = pnand %p1005_p9, %p1001_p8 }
 0x1a5   : > { %1009 = shalt.err (!%p1006_p2)
}
 0x1a6   : > { %763 = dma.vmem_to_hbm [thread:$0]  (%p1604_p4), %s540_s1, 32, %s537_s12, %s526_s5  }
 0x1a7 PF: > { %s1605_s2 = sld [smem:[#allocation14_spill]]  ;;  %p780_p11 = scmp.ge.s32.totalorder %s1136_s25, 2 }
 0x1a8   : > { %p1606_p3 = scmp.ne.s32.totalorder %s1594_s6, 0 }
 0x1aa   : > { %p776_p13 = pnand %p780_p11, %p1606_p3 }
 0x1ac   : > { %p777_p5 = pneg %p776_p13 }
 0x1ad   : > { %s551_s26 = sand.u32 1, %s1605_s2  }
 0x1ae   : > { %s552_s15 = scalar_lea.sflag [#allocation5], %s551_s26 }
 0x1af   : > { %1079 = dma.done.wait (%p777_p5), %s552_s15, 32  }
 0x1b0   : > { %1081 = vsyncadd (%p777_p5), %s552_s15, 4294967264  ;;  %s22_s25 = sadd.s32 1, %s1136_s25   ;;  %s1608_s12 = sld [smem:[#allocation15_spill]] }
 0x1b1   : > { %p1510_p1 = scmp.ge.s32.totalorder %s22_s25, 8   ;;  %s1609_s3 = sld [smem:[#allocation18_spill]] }
 0x1b2   : > { %s1610_s6 = sld [smem:[#allocation19_spill]]  ;;  %s1612_s13 = smov %s1092_s14 }
 0x1b3   : > { %s1613_s14 = smov %s1352_s18  ;;  %s1614_s15 = smov %s1100_s16 }
 0x1b4   : > { %s1615_s16 = smov %s1104_s17  ;;  %s1616_s17 = smov %s1271_s11 }
 0x1b5   : > { %s1617_s18 = smov %s1112_s19  ;;  %s1618_s19 = smov %s1116_s20 }
 0x1b6   : > { %s1619_s20 = smov %s1307_s8  ;;  %s1620_s21 = smov %s1128_s23 }
 0x1b7   : > { %s1621_s22 = smov %s1132_s24  ;;  %s1622_s23 = smov %s1609_s3 }
 0x1b8   : > { %s1623_s24 = smov %s1610_s6  ;;  %21 = sbr.rel (!%p1510_p1) target bundleno = 17 (0x11), region = 109 }
 0x1bd   :  { %557 = vsyncpa [#allocation4], 1 }
 0x1be   :  { %559 = vsyncpa [#allocation4 + $0x1], 1 }
 0x1bf   :  { %560 = vsyncpa [#allocation7], 1 }
 0x1c0   :  { %562 = vsyncpa [#allocation7 + $0x1], 1 }
 0x1c1   :  { %563 = vsyncpa [#allocation5], 1 }
 0x1c2   :  { %565 = vsyncpa [#allocation5 + $0x1], 1 }

</bundles_post_ra>
